<compile_context>
chip_gen: v5e
topology: v5e:2x2
jax: 0.10.0
libtpu: 0.0.40
codegen_flags: <defaults>
</compile_context>

<pallas_src>
import jax
import jax.numpy as jnp
from jax.experimental import pallas as pl
from jax.experimental.pallas import tpu as pltpu

_MIB = 1024 * 1024


# --------------------------------------------------------------------------------
# Kernel
# --------------------------------------------------------------------------------
def _make_kernel(use_mxu: bool):
    """Build the attention-pooling kernel.

    Grid: (batch blocks, sequence blocks); the sequence axis is an "arbitrary"
    reduction axis with online-softmax accumulators held in VMEM scratch.
    """

    def attention_kernel(hs_ref, mask_ref, fc_ref, te_ref, out_ref,
                         m_sc, l_sc, acc_sc):
        # hs_ref:   (tb, ts, H)  hidden_state tile
        # mask_ref: (tb, ts)     {0,1} mask, lane-dense over S
        # fc_ref:   (1, H)       shared fc parameter (row layout)
        # te_ref:   (tb, H)      per-batch type embedding (row layout)
        # out_ref:  (tb, H)      output (resident across the sequence axis)
        # m_sc/l_sc/acc_sc: online-softmax running max / denom / weighted sum (f32)
        s_idx = pl.program_id(1)

        @pl.when(s_idx == 0)
        def _init():
            m_sc[...] = jnp.full_like(m_sc, -jnp.inf)
            l_sc[...] = jnp.zeros_like(l_sc)
            acc_sc[...] = jnp.zeros_like(acc_sc)

        hs = hs_ref[...]                                            # (tb, ts, H)
        fc_eff = (fc_ref[...] + te_ref[...]).astype(hs.dtype)       # (tb, H)

        # q[b, s] = sum_h hs[b, s, h] * fc_eff[b, h]   (f32 accumulation)
        if use_mxu:
            # MXU path (v7x): keeps the VALU slot free; no (tb, ts, H) temporaries.
            q = jnp.einsum("bsh,bkh->bsk", hs, fc_eff[:, None, :],
                           preferred_element_type=jnp.float32)[:, :, 0]   # (tb, ts)
        else:
            # VPU multiply + lane reduce over H (proven path on v5e/v6e).
            q = jnp.sum(hs * fc_eff[:, None, :], axis=-1,
                        dtype=jnp.float32)                                # (tb, ts)

        # masked_fill((1 - mask).bool(), -10000.0) -- matches PyTorch (not -inf), so
        # fully-masked rows give a uniform distribution instead of NaN.
        q = jnp.where(mask_ref[...] != 0, q, jnp.float32(-10000.0))       # (tb, ts)

        # Online softmax update over the sequence chunk (lane-dense over ts).
        m_prev = m_sc[...]                                                # (tb, 1)
        m_new = jnp.maximum(m_prev, jnp.max(q, axis=-1, keepdims=True))   # (tb, 1)
        alpha = jnp.exp(m_prev - m_new)                                   # (tb, 1)
        p = jnp.exp(q - m_new)                                            # (tb, ts)
        l_sc[...] = alpha * l_sc[...] + jnp.sum(p, axis=-1, keepdims=True)

        # h_contrib[b, h] = sum_s p[b, s] * hs[b, s, h]   (f32 accumulation)
        w = p.astype(hs.dtype)
        if use_mxu:
            contrib = jnp.einsum("bqs,bsh->bqh", w[:, None, :], hs,
                                 preferred_element_type=jnp.float32)[:, 0, :]
        else:
            contrib = jnp.sum(w[:, :, None] * hs, axis=1, dtype=jnp.float32)
        acc_sc[...] = alpha * acc_sc[...] + contrib                       # (tb, H)
        m_sc[...] = m_new

        @pl.when(s_idx == pl.num_programs(1) - 1)
        def _finalize():
            # Exact division: it acts on a (tb, H) tile only, so it is essentially
            # free and matches the PyTorch reference more tightly than approx recip.
            out_ref[...] = (acc_sc[...] / l_sc[...]).astype(out_ref.dtype)

    return attention_kernel


# --------------------------------------------------------------------------------
# Wrapper-side tiling policy
# --------------------------------------------------------------------------------
def _tpu_generation_info():
    """Return (vmem_capacity_bytes, is_v7x_like) with conservative fallbacks."""
    cap = None
    try:
        cap = int(pltpu.get_tpu_info().vmem_capacity_bytes)
    except Exception:
        cap = None
    kind = ""
    try:
        kind = jax.devices()[0].device_kind.lower()
    except Exception:
        kind = ""
    is_v7x = ("v7" in kind) or ("7x" in kind)
    if cap is None:
        if any(v in kind for v in ("v4", "v5", "v6")):
            cap = 128 * _MIB          # v4/v5e/v5p/v6e: 128 MiB VMEM per TensorCore
        else:
            cap = 64 * _MIB           # v7x / unknown: assume the small-VMEM case
    return cap, is_v7x


def _choose_tiles(B, S, H, itemsize, data_budget, prefer_even_blocks):
    """Pick (tb, ts) so the double-buffered blocks + in-kernel temporaries fit
    `data_budget`, tb is sublane-aligned (or == B), and no input padding is needed."""
    sub = {4: 8, 2: 16, 1: 32}.get(itemsize, 8)

    def bytes_per_row(ts):
        hs_blk = ts * H * itemsize
        # double-buffered input blocks (hs, mask, te) + double-buffered output block
        dbuf_io = 2 * hs_blk + 2 * ts * itemsize + 2 * H * itemsize + 2 * H * itemsize
        # f32 scratch accumulators
        scratch = H * 4 + 8
        # conservative allowance for materialized elementwise temporaries on the VPU
        # path (product block in the input dtype + an f32 upcast + small (ts,) temps)
        temps = hs_blk + ts * H * 4 + 4 * ts * 4
        return dbuf_io + scratch + temps

    # ---- sequence tiling: keep at least `sub` batch rows per block in budget ----
    ts = S
    min_rows = min(B, sub)
    if min_rows * bytes_per_row(S) > data_budget:
        # Chunk S.  ts must be a multiple of 128 (mask block minor dim) and divide S
        # so no ragged sequence columns ever enter the softmax accumulators.
        cand = (S // 128) * 128
        found = None
        while cand >= 128:
            if S % cand == 0 and min_rows * bytes_per_row(cand) <= data_budget:
                found = cand
                break
            cand -= 128
        if found is not None:
            ts = found
        # else: fall back to ts = S (see TODO at the top of the file).

    # ---- batch tiling ----
    tb_max = max(1, data_budget // bytes_per_row(ts))
    if B <= tb_max:
        tb = B
        # On multi-TensorCore chips (v7x) split into 2 aligned blocks so both cores
        # get work; single-TC chips take the whole batch in one block.
        if prefer_even_blocks and B >= 2 * sub:
            tb = sub * pl.cdiv(pl.cdiv(B, 2), sub)
    else:
        tb = (tb_max // sub) * sub
        if tb < sub:
            tb = min(B, sub)
        else:
            # Prefer a divisor of B (no ragged tail) if one exists without giving up
            # more than ~half of the budget-optimal block.
            t = tb
            while t >= max(sub, tb // 2):
                if B % t == 0:
                    tb = t
                    break
                t -= sub
            if prefer_even_blocks:
                # Keep the number of batch blocks even so the two TensorCores balance.
                gb = pl.cdiv(B, tb)
                if gb > 1 and gb % 2 == 1:
                    t = tb - sub
                    while t >= sub:
                        if pl.cdiv(B, t) % 2 == 0:
                            tb = t
                            break
                        t -= sub
    return int(max(1, min(tb, B))), int(ts)


# --------------------------------------------------------------------------------
# Public entry point
# --------------------------------------------------------------------------------
def attention_forward(hidden_state, mask, fc, type_embed, *, block_b=None):
    """hidden_state: (B, S, H); mask: (B, S); fc: (H, 1); type_embed: (B, H, 1) -> (B, H)."""
    B, S, H = hidden_state.shape
    dtype = hidden_state.dtype
    itemsize = jnp.dtype(dtype).itemsize

    vmem_cap, is_v7x = _tpu_generation_info()
    if vmem_cap >= 128 * _MIB:
        data_budget, vmem_limit = 48 * _MIB, 100 * _MIB     # v4/v5e/v6e: use the VMEM
    else:
        data_budget, vmem_limit = 18 * _MIB, 40 * _MIB      # v7x: leave headroom under 64 MiB

    tb, ts = _choose_tiles(B, S, H, itemsize, data_budget, prefer_even_blocks=is_v7x)
    if block_b is not None:
        tb = int(min(block_b, B))
    grid_b = pl.cdiv(B, tb)     # ragged last block allowed: Pallas truncates it,
    grid_s = pl.cdiv(S, ts)     # and rows are independent so no contamination.

    mask2 = mask.astype(dtype)                      # (B, S), lane-dense over S
    fc_row = fc.reshape(1, H).astype(dtype)         # (1, H), shared across batch
    te_row = type_embed.reshape(B, H).astype(dtype) # (B, H)

    cost = pl.CostEstimate(
        flops=4 * B * S * H + 8 * B * S,
        transcendentals=B * S + B,
        bytes_accessed=(B * S * H + B * S + B * H + H + B * H) * itemsize,
    )

    out = pl.pallas_call(
        _make_kernel(use_mxu=is_v7x),
        out_shape=jax.ShapeDtypeStruct((B, H), dtype),
        grid_spec=pltpu.PrefetchScalarGridSpec(
            num_scalar_prefetch=0,
            grid=(grid_b, grid_s),
            in_specs=[
                pl.BlockSpec((tb, ts, H), lambda b, s: (b, s, 0)),   # hidden_state
                pl.BlockSpec((tb, ts), lambda b, s: (b, s)),         # mask
                pl.BlockSpec((1, H), lambda b, s: (0, 0)),           # fc (shared)
                pl.BlockSpec((tb, H), lambda b, s: (b, 0)),          # type_embed
            ],
            out_specs=pl.BlockSpec((tb, H), lambda b, s: (b, 0)),    # resident over s
            scratch_shapes=[
                pltpu.VMEM((tb, 1), jnp.float32),   # running max
                pltpu.VMEM((tb, 1), jnp.float32),   # running denom
                pltpu.VMEM((tb, H), jnp.float32),   # running weighted sum
            ],
        ),
        compiler_params=pltpu.CompilerParams(
            dimension_semantics=("parallel", "arbitrary"),
            vmem_limit_bytes=int(vmem_limit),
        ),
        cost_estimate=cost,
    )(hidden_state, mask2, fc_row, te_row)

    return out


def attention_reference(hidden_state, mask, fc, type_embed):
    # Pure-JAX reference mirroring the PyTorch forward exactly.
    fc_eff = fc[None, :, :] + type_embed                      # (B, H, 1)
    q = jnp.squeeze(hidden_state @ fc_eff, axis=-1)           # (B, S)
    q = jnp.where(mask != 0, q, jnp.float32(-10000.0))
    w = jax.nn.softmax(q, axis=-1)[:, None, :]                # (B, 1, S)
    h = jnp.squeeze(w @ hidden_state, axis=1)                 # (B, H)
    return h


if __name__ == "__main__":
    B, S, H = 2, 8, 32

    key = jax.random.PRNGKey(0)
    k_hs, k_fc, k_te = jax.random.split(key, 3)

    hidden_state = jax.random.normal(k_hs, (B, S, H), dtype=jnp.float32)

    # mask: valid lengths [8, 5]
    lengths = jnp.array([8, 5])
    mask = (jnp.arange(S)[None, :] < lengths[:, None]).astype(jnp.float32)  # (B, S)

    # nn.init.kaiming_uniform_(fc, a=sqrt(5)) on a (H, 1) tensor -> U(-1, 1)
    fc = jax.random.uniform(k_fc, (H, 1), dtype=jnp.float32, minval=-1.0, maxval=1.0)
    type_embed = 0.1 * jax.random.normal(k_te, (B, H, 1), dtype=jnp.float32)

    out = attention_forward(hidden_state, mask, fc, type_embed)
    out = jax.block_until_ready(out)

    ref = attention_reference(hidden_state, mask, fc, type_embed)
    assert out.shape == (B, H)
    # Tolerance covers possible reduced-precision matmul passes (reference default
    # precision on TPU / MXU path on v7x); the VPU path matches far tighter.
    assert jnp.allclose(out, ref, atol=5e-3, rtol=5e-3), "mismatch vs reference"

    print("KERNEL_OK")
</pallas_src>

<mosaic_0001>
module attributes {stable_mosaic.version = 11 : i64} {
  func.func @attention_kernel(%arg0: i32, %arg1: i32, %arg2: memref<2x8x32xf32, #tpu.memory_space<vmem>>, %arg3: memref<2x8xf32, #tpu.memory_space<vmem>>, %arg4: memref<1x32xf32, #tpu.memory_space<vmem>>, %arg5: memref<2x32xf32, #tpu.memory_space<vmem>>, %arg6: memref<2x32xf32, #tpu.memory_space<vmem>>, %arg7: memref<2x1xf32, #tpu.memory_space<vmem>>, %arg8: memref<2x1xf32, #tpu.memory_space<vmem>>, %arg9: memref<2x32xf32, #tpu.memory_space<vmem>>) attributes {dimension_semantics = [#tpu.dimension_semantics<parallel>, #tpu.dimension_semantics<arbitrary>], iteration_bounds = array<i64: 1, 1>, scalar_prefetch = 0 : i64, scratch_operands = 3 : i64, tpu.core_type = #tpu.core_type<tc>, window_params = [{transform_indices = @transform_0, window_bounds = array<i64: 2, 8, 32>}, {transform_indices = @transform_1, window_bounds = array<i64: 2, 8>}, {pipeline_mode = #tpu.pipeline_mode<synchronous>, transform_indices = @transform_2, window_bounds = array<i64: 1, 32>}, {transform_indices = @transform_3, window_bounds = array<i64: 2, 32>}, {transform_indices = @transform_4, window_bounds = array<i64: 2, 32>}]} {
    %c0_i32 = arith.constant 0 : i32
    %0 = arith.cmpi eq, %arg1, %c0_i32 : i32
    %1 = arith.extui %0 : i1 to i32
    %c0_i32_0 = arith.constant 0 : i32
    %2 = arith.cmpi ne, %1, %c0_i32_0 : i32
    scf.if %2 {
      %cst_28 = arith.constant 0xFF800000 : f32
      %45 = vector.broadcast %cst_28 : f32 to vector<2x1xf32>
      %c0_29 = arith.constant 0 : index
      %c0_30 = arith.constant 0 : index
      %46 = vector.load %arg7[%c0_29, %c0_30] : memref<2x1xf32, #tpu.memory_space<vmem>>, vector<2x1xf32>
      tpu.vector_store %arg7[%c0_29, %c0_30], %45 {strides = array<i32>} : memref<2x1xf32, #tpu.memory_space<vmem>>, vector<2x1xf32>,
      %cst_31 = arith.constant 0.000000e+00 : f32
      %47 = vector.broadcast %cst_31 : f32 to vector<2x1xf32>
      %c0_32 = arith.constant 0 : index
      %c0_33 = arith.constant 0 : index
      %48 = vector.load %arg8[%c0_32, %c0_33] : memref<2x1xf32, #tpu.memory_space<vmem>>, vector<2x1xf32>
      tpu.vector_store %arg8[%c0_32, %c0_33], %47 {strides = array<i32>} : memref<2x1xf32, #tpu.memory_space<vmem>>, vector<2x1xf32>,
      %cst_34 = arith.constant 0.000000e+00 : f32
      %49 = vector.broadcast %cst_34 : f32 to vector<2x32xf32>
      %c0_35 = arith.constant 0 : index
      %c0_36 = arith.constant 0 : index
      %50 = vector.load %arg9[%c0_35, %c0_36] : memref<2x32xf32, #tpu.memory_space<vmem>>, vector<2x32xf32>
      tpu.vector_store %arg9[%c0_35, %c0_36], %49 {strides = array<i32>} : memref<2x32xf32, #tpu.memory_space<vmem>>, vector<2x32xf32>,
    } else {
    }
    %c0 = arith.constant 0 : index
    %c0_1 = arith.constant 0 : index
    %c0_2 = arith.constant 0 : index
    %3 = vector.load %arg2[%c0, %c0_1, %c0_2] : memref<2x8x32xf32, #tpu.memory_space<vmem>>, vector<2x8x32xf32>
    %c0_3 = arith.constant 0 : index
    %c0_4 = arith.constant 0 : index
    %4 = vector.load %arg4[%c0_3, %c0_4] : memref<1x32xf32, #tpu.memory_space<vmem>>, vector<1x32xf32>
    %c0_5 = arith.constant 0 : index
    %c0_6 = arith.constant 0 : index
    %5 = vector.load %arg5[%c0_5, %c0_6] : memref<2x32xf32, #tpu.memory_space<vmem>>, vector<2x32xf32>
    %6 = vector.broadcast %4 : vector<1x32xf32> to vector<2x32xf32>
    %7 = arith.addf %6, %5 : vector<2x32xf32>
    %8 = vector.shape_cast %7 : vector<2x32xf32> to vector<2x1x32xf32>
    %9 = vector.broadcast %8 : vector<2x1x32xf32> to vector<2x8x32xf32>
    %10 = arith.mulf %3, %9 : vector<2x8x32xf32>
    %cst = arith.constant dense<0.000000e+00> : vector<2x8xf32>
    %11 = vector.multi_reduction <add>, %10, %cst [2] : vector<2x8x32xf32> to vector<2x8xf32>
    %c0_7 = arith.constant 0 : index
    %c0_8 = arith.constant 0 : index
    %12 = vector.load %arg3[%c0_7, %c0_8] : memref<2x8xf32, #tpu.memory_space<vmem>>, vector<2x8xf32>
    %cst_9 = arith.constant 0.000000e+00 : f32
    %13 = vector.broadcast %cst_9 : f32 to vector<2x8xf32>
    %14 = arith.cmpf one, %12, %13 : vector<2x8xf32>
    %cst_10 = arith.constant -1.000000e+04 : f32
    %15 = vector.broadcast %cst_10 : f32 to vector<2x8xf32>
    %16 = arith.select %14, %11, %15 : vector<2x8xi1>, vector<2x8xf32>
    %c0_11 = arith.constant 0 : index
    %c0_12 = arith.constant 0 : index
    %17 = vector.load %arg7[%c0_11, %c0_12] : memref<2x1xf32, #tpu.memory_space<vmem>>, vector<2x1xf32>
    %cst_13 = arith.constant dense<0xFF800000> : vector<2xf32>
    %18 = vector.multi_reduction <maximumf>, %16, %cst_13 [1] : vector<2x8xf32> to vector<2xf32>
    %19 = vector.shape_cast %18 : vector<2xf32> to vector<2x1xf32>
    %20 = arith.maximumf %17, %19 : vector<2x1xf32>
    %21 = arith.subf %17, %20 : vector<2x1xf32>
    %22 = math.exp %21 : vector<2x1xf32>
    %23 = vector.broadcast %20 : vector<2x1xf32> to vector<2x8xf32>
    %24 = arith.subf %16, %23 : vector<2x8xf32>
    %25 = math.exp %24 : vector<2x8xf32>
    %c0_14 = arith.constant 0 : index
    %c0_15 = arith.constant 0 : index
    %26 = vector.load %arg8[%c0_14, %c0_15] : memref<2x1xf32, #tpu.memory_space<vmem>>, vector<2x1xf32>
    %27 = arith.mulf %22, %26 : vector<2x1xf32>
    %cst_16 = arith.constant dense<0.000000e+00> : vector<2xf32>
    %28 = vector.multi_reduction <add>, %25, %cst_16 [1] : vector<2x8xf32> to vector<2xf32>
    %29 = vector.shape_cast %28 : vector<2xf32> to vector<2x1xf32>
    %30 = arith.addf %27, %29 : vector<2x1xf32>
    %c0_17 = arith.constant 0 : index
    %c0_18 = arith.constant 0 : index
    %31 = vector.load %arg8[%c0_17, %c0_18] : memref<2x1xf32, #tpu.memory_space<vmem>>, vector<2x1xf32>
    tpu.vector_store %arg8[%c0_17, %c0_18], %30 {strides = array<i32>} : memref<2x1xf32, #tpu.memory_space<vmem>>, vector<2x1xf32>,
    %32 = vector.shape_cast %25 : vector<2x8xf32> to vector<2x8x1xf32>
    %33 = vector.broadcast %32 : vector<2x8x1xf32> to vector<2x8x32xf32>
    %34 = arith.mulf %33, %3 : vector<2x8x32xf32>
    %cst_19 = arith.constant dense<0.000000e+00> : vector<2x32xf32>
    %35 = vector.multi_reduction <add>, %34, %cst_19 [1] : vector<2x8x32xf32> to vector<2x32xf32>
    %c0_20 = arith.constant 0 : index
    %c0_21 = arith.constant 0 : index
    %36 = vector.load %arg9[%c0_20, %c0_21] : memref<2x32xf32, #tpu.memory_space<vmem>>, vector<2x32xf32>
    %37 = vector.broadcast %22 : vector<2x1xf32> to vector<2x32xf32>
    %38 = arith.mulf %37, %36 : vector<2x32xf32>
    %39 = arith.addf %38, %35 : vector<2x32xf32>
    %c0_22 = arith.constant 0 : index
    %c0_23 = arith.constant 0 : index
    %40 = vector.load %arg9[%c0_22, %c0_23] : memref<2x32xf32, #tpu.memory_space<vmem>>, vector<2x32xf32>
    tpu.vector_store %arg9[%c0_22, %c0_23], %39 {strides = array<i32>} : memref<2x32xf32, #tpu.memory_space<vmem>>, vector<2x32xf32>,
    %c0_24 = arith.constant 0 : index
    %c0_25 = arith.constant 0 : index
    %41 = vector.load %arg7[%c0_24, %c0_25] : memref<2x1xf32, #tpu.memory_space<vmem>>, vector<2x1xf32>
    tpu.vector_store %arg7[%c0_24, %c0_25], %20 {strides = array<i32>} : memref<2x1xf32, #tpu.memory_space<vmem>>, vector<2x1xf32>,
    %c0_i32_26 = arith.constant 0 : i32
    %42 = arith.cmpi eq, %arg1, %c0_i32_26 : i32
    %43 = arith.extui %42 : i1 to i32
    %c0_i32_27 = arith.constant 0 : i32
    %44 = arith.cmpi ne, %43, %c0_i32_27 : i32
    scf.if %44 {
      %c0_28 = arith.constant 0 : index
      %c0_29 = arith.constant 0 : index
      %45 = vector.load %arg9[%c0_28, %c0_29] : memref<2x32xf32, #tpu.memory_space<vmem>>, vector<2x32xf32>
      %c0_30 = arith.constant 0 : index
      %c0_31 = arith.constant 0 : index
      %46 = vector.load %arg8[%c0_30, %c0_31] : memref<2x1xf32, #tpu.memory_space<vmem>>, vector<2x1xf32>
      %47 = vector.broadcast %46 : vector<2x1xf32> to vector<2x32xf32>
      %48 = arith.divf %45, %47 : vector<2x32xf32>
      %c0_32 = arith.constant 0 : index
      %c0_33 = arith.constant 0 : index
      %49 = vector.load %arg6[%c0_32, %c0_33] : memref<2x32xf32, #tpu.memory_space<vmem>>, vector<2x32xf32>
      tpu.vector_store %arg6[%c0_32, %c0_33], %48 {strides = array<i32>} : memref<2x32xf32, #tpu.memory_space<vmem>>, vector<2x32xf32>,
    } else {
    }
    return
  }
  func.func @transform_0(%arg0: i32, %arg1: i32) -> (i32, i32, i32) {
    %c0_i32 = arith.constant 0 : i32
    %c0_i32_0 = arith.constant 0 : i32
    return %arg0, %arg1, %c0_i32 : i32, i32, i32
  }
  func.func @transform_1(%arg0: i32, %arg1: i32) -> (i32, i32) {
    %c0_i32 = arith.constant 0 : i32
    return %arg0, %arg1 : i32, i32
  }
  func.func @transform_2(%arg0: i32, %arg1: i32) -> (i32, i32) {
    %c0_i32 = arith.constant 0 : i32
    %c0_i32_0 = arith.constant 0 : i32
    %c0_i32_1 = arith.constant 0 : i32
    return %c0_i32, %c0_i32_0 : i32, i32
  }
  func.func @transform_3(%arg0: i32, %arg1: i32) -> (i32, i32) {
    %c0_i32 = arith.constant 0 : i32
    %c0_i32_0 = arith.constant 0 : i32
    return %arg0, %c0_i32 : i32, i32
  }
  func.func @transform_4(%arg0: i32, %arg1: i32) -> (i32, i32) {
    %c0_i32 = arith.constant 0 : i32
    %c0_i32_0 = arith.constant 0 : i32
    return %arg0, %c0_i32 : i32, i32
  }
}

</mosaic_0001>

<bundles_post_ra>
// kernel: tpu_custom_call.1
= control target key start
LH: loop header
LB: loop body
LE: loop exit
PB: predicated region body
PF: predicated region fallthrough
CT: control target
= control target key end

     0   :  { %9 = vsyncpa [#allocation6], 0  ;;  %s410_s0 = inlined_call_operand.hbm [shape: f32[2,8,32], index: 0, kind: input, shape index: {}]   ;;  %s411_s1 = inlined_call_operand.hbm [shape: f32[2,8], index: 1, kind: input, shape index: {}]   ;;  %s412_s2 = inlined_call_operand.hbm [shape: f32[1,32], index: 2, kind: input, shape index: {}]   ;;  %s413_s3 = inlined_call_operand.vmem [shape: f32[2,32], index: 3, kind: input, shape index: {}]   ;;  %s414_s4 = inlined_call_operand.hbm [shape: f32[2,32], index: 4, kind: output, shape index: {}]  }
   0x1   :  { %10 = vsyncpa [#allocation9], 0  ;;  %s30_s17 = sshll.u32 %s411_s1, 4  ;;  %s31_s17 = int_to_ptr.hbm [resolvable:$true] %s30_s17 }
   0x2   :  { %11 = vsyncpa [#allocation7], 0  ;;  %s342_s18 = smov [#allocation8]   ;;  %s16_s22 = sshll.u32 %s410_s0, 4  ;;  %s17_s22 = int_to_ptr.hbm [resolvable:$true] %s16_s22 }
   0x3   :  { %s32_s19 = sshll.u32 %s342_s18, 4  ;;  %s343_s23 = smov [#allocation5]   ;;  %s33_s19 = int_to_ptr.vmem [resolvable:$true] %s32_s19 }
   0x4   :  { %35 = dma.hbm_to_vmem [thread:$0]  %s31_s17, 32, %s33_s19, [#allocation9]  }
   0x5   :  { %s18_s24 = sshll.u32 %s343_s23, 4  ;;  %s344_s25 = smov 128   ;;  %s19_s24 = int_to_ptr.vmem [resolvable:$true] %s18_s24 }
   0x6   :  { %s345_s26 = smov 8   ;;  %s41_s1 = sshll.u32 %s412_s2, 4  ;;  %s42_s1 = int_to_ptr.hbm [resolvable:$true] %s41_s1 }
   0x7   :  { %24 = dma.hbm_to_vmem [thread:$0]  %s17_s22, 256, %s19_s24, [#allocation6], %s344_s25, %s344_s25, %s345_s26  }
   0x8   :  { %s346_s29 = smov [#allocation10]  }
   0x9   :  { %s43_s30 = sshll.u32 %s346_s29, 4  ;;  %s44_s30 = int_to_ptr.vmem [resolvable:$true] %s43_s30 }
   0xa   :  { %46 = dma.hbm_to_vmem [thread:$0]  %s42_s1, 16, %s44_s30, [#allocation9]  }
   0xb   :  { %336 = dma.done.wait [#allocation6], 256  }
   0xc   :  { %337 = vsyncadd [#allocation6], 4294967040 }
   0xd   :  { %338 = dma.done.wait [#allocation9], 48  }
   0xe   :  { %339 = vsyncadd [#allocation9], 4294967248  ;;  %v73_v0 = vld [vmem:[%s413_s3] sm:$0x3]  ;;  %v233_v1 = vld [vmem:[#allocation10] ss:$0 sm:$0xff]  ;;  %v97_v14 = vlaneseq }
   0xf   :  { %v77_v2 = vadd.f32 %v233_v1, %v73_v0  ;;  %v388_v3 = vld [vmem:[#allocation5] sm:$0xff]  ;;  %vm86_vm0 = vcmask 261120   ;;  %v71_v8 = vld [vmem:[#allocation5 + $0x8] sm:$0xff]  ;;  %vm65_vm1 = vcmask 1024   ;;  %v347_v12 = vmov -inf   ;;  %s350_s2 = smov [#allocation11]  }
  0x10   :  { %66 = vst.msk [vmem:[#allocation2] sm:$0x3] %vm65_vm1, %v347_v12  ;;  %v98_v15 = vand.u32 127, %v97_v14  ;;  %v93_v16 = vld [vmem:[#allocation8] sm:$0x3]  ;;  %vm101_vm2 = vcmask 1041409  }
  0x11   :  { %v80_v4 = vperm.slane %v77_v2, 0  ;;  %v79_v5 = vrot.slane %v77_v2, 1  ;;  %vm94_vm3 = vcmp.ne.f32.partialorder %v93_v16, 0.0  ;;  %vm106_vm4 = vcmask 58368   ;;  %s206_s3 = sshll.u32 %s350_s2, 4  ;;  %s208_s8 = sshll.u32 %s414_s4, 4  ;;  %s207_s3 = int_to_ptr.vmem [resolvable:$true] %s206_s3  ;;  %s209_s8 = int_to_ptr.hbm [resolvable:$true] %s208_s8 }
  0x12   :  { %v348_v23 = vmov 0   ;;  %v349_v24 = vmov 0.0   ;;  %vm68_vm5 = vcmask 254976   ;;  %v132_v31 = vshrl.u32 %v97_v14, 7 }
  0x13   :  { %v84_v6 = vmul.f32 %v80_v4, %v388_v3  ;;  %v81_v7 = vperm.slane %v79_v5, 0  ;;  %228 = vset.pattern.permute.xlu1 %v348_v23  ;;  %67 = vst.msk [vmem:[#allocation3] sm:$0x3] %vm65_vm1, %v349_v24 }
  0x14   :  { %69 = vst.msk [vmem:[#allocation4] sm:$0x3] %vm68_vm5, %v349_v24  ;;  %230 = vset.pattern.permute.xlu0 %v132_v31  ;;  %229 = vset.pattern.permute.xlu2 %v132_v31 }
  0x15   :  { %v87_v9 = vsel %vm86_vm0, %v84_v6, 0.0  ;;  %v85_v10 = vmul.f32 %v81_v7, %v71_v8 }
  0x16   :  { %88 = vadd.xlane.f32.xlu0 %v87_v9 }
  0x17   :  { %v90_v11 = vsel %vm86_vm0, %v85_v10, 0.0  ;;  %v105_v25 = vld [vmem:[#allocation2] sm:$0x3] }
  0x1a   :  { %v122_v39 = vld [vmem:[#allocation3] sm:$0x3] }
  0x1b   :  { %v160_v59 = vld [vmem:[#allocation4] sm:$0x3] }
  0x1e   :  { %91 = vadd.xlane.f32.xlu0 %v90_v11 }
  0x89   :  { %v89_v13 = vpop.xlane.xlu0 %88 }
  0x8a   :  { %v99_v18 = vperm.slane %v89_v13, %v98_v15 }
  0x91   :  { %v92_v17 = vpop.xlane.xlu0 %91 }
  0x92   :  { %v100_v19 = vperm.slane %v92_v17, %v98_v15 }
  0x94   :  { %v102_v20 = vsel %vm101_vm2, %v100_v19, %v99_v18 }
  0x95   :  { %v104_v21 = vsel %vm94_vm3, %v102_v20, -10000.0 }
  0x96   :  { %v107_v22 = vsel %vm106_vm4, %v104_v21, -inf }
  0x97   :  { %108 = vmax.xlane.f32.xlu1 %v107_v22 }
 0x10a   :  { %v109_v26 = vpop.xlane.xlu1 %108 }
 0x10b   :  { %v110_v27 = vmax.f32 %v105_v25, %v109_v26 }
 0x10d   :  { %v111_v28 = vsub.f32 %v105_v25, %v110_v27  ;;  %174 = vst.msk [vmem:[#allocation2] sm:$0x3] %vm65_vm1, %v110_v27  ;;  %116 = vperm.xlu1 %228, %v110_v27  }
 0x10f   :  { %v112_v29 = vmul.f32 1.442695, %v111_v28 }
 0x111   :  { %234 = vpow2.f32 %v112_v29 }
 0x117   :  { %v235_v30 = vpop.eup %234 }
 0x118   :  { %163 = vperm.xlu1 %228, %v235_v30   ;;  %v123_v40 = vmul.f32 %v235_v30, %v122_v39 }
 0x17f   :  { %v117_v32 = vpop.permute.xlu1 %116 }
 0x180   :  { %v119_v33 = vsub.f32 %v104_v21, %v117_v32 }
 0x182   :  { %v120_v34 = vmul.f32 1.442695, %v119_v33 }
 0x184   :  { %236 = vpow2.f32 %v120_v34 }
 0x18a   :  { %v237_v35 = vpop.eup %236  ;;  %v164_v60 = vpop.permute.xlu1 %163 }
 0x18b   :  { %v124_v36 = vsel %vm106_vm4, %v237_v35, 0.0  ;;  %v137_v37 = vperm.slane %v237_v35, 1  ;;  %v130_v38 = vperm.slane %v237_v35, 0  ;;  %v166_v0 = vmul.f32 %v164_v60, %v160_v59 }
 0x18c   :  { %125 = vadd.xlane.f32.xlu2 %v124_v36 }
 0x18d   :  { %142 = vperm.xlu0 %230, %v137_v37  }
 0x195   :  { %232 = vset.pattern.permute.xlu0 %v348_v23 }
 0x1a4   :  { %135 = vperm.xlu2 %229, %v130_v38  }
 0x1ac   :  { %231 = vset.pattern.permute.xlu2 %v348_v23 }
 0x1ff   :  { %v143_v41 = vpop.permute.xlu0 %142  ;;  %v126_v42 = vpop.xlane.xlu2 %125 }
 0x200   :  { %v145_v43 = vmul.f32 %v143_v41, %v71_v8  ;;  %v127_v44 = vadd.f32 %v126_v42, %v123_v40 }
 0x202   :  { %v153_v45 = vsel %vm86_vm0, %v145_v43, 0.0  ;;  %129 = vst.msk [vmem:[#allocation3] sm:$0x3] %vm65_vm1, %v127_v44 }
 0x203   :  { %v154_v46 = vrot.slane %v153_v45, 4 }
 0x205   :  { %v155_v47 = vadd.f32 %v154_v46, %v153_v45 }
 0x207   :  { %v136_v48 = vpop.permute.xlu2 %135  ;;  %v156_v50 = vrot.slane %v155_v47, 2 }
 0x208   :  { %v144_v49 = vmul.f32 %v136_v48, %v388_v3 }
 0x209   :  { %v179_v51 = vld [vmem:[#allocation3] sm:$0x3]  ;;  %v157_v54 = vadd.f32 %v156_v50, %v155_v47 }
 0x20a   :  { %v146_v52 = vsel %vm86_vm0, %v144_v49, 0.0  ;;  %182 = vperm.xlu2 %231, %v179_v51  }
 0x20b   :  { %v147_v53 = vrot.slane %v146_v52, 4  ;;  %v158_v57 = vrot.slane %v157_v54, 1 }
 0x20d   :  { %v148_v55 = vadd.f32 %v147_v53, %v146_v52  ;;  %v159_v62 = vadd.f32 %v158_v57, %v157_v54 }
 0x20f   :  { %v149_v56 = vrot.slane %v148_v55, 2 }
 0x211   :  { %v150_v58 = vadd.f32 %v149_v56, %v148_v55 }
 0x213   :  { %v151_v61 = vrot.slane %v150_v58, 1 }
 0x215   :  { %v152_v63 = vadd.f32 %v151_v61, %v150_v58 }
 0x217   :  { %v169_v1 = vsel %vm101_vm2, %v159_v62, %v152_v63 }
 0x218   :  { %v171_v2 = vadd.f32 %v169_v1, %v166_v0 }
 0x21a   :  { %173 = vst.msk [vmem:[#allocation4] sm:$0x3] %vm68_vm5, %v171_v2 }
 0x221   :  { %v178_v14 = vld [vmem:[#allocation4] sm:$0x3] }
 0x264   :  { %v183_v3 = vpop.permute.xlu2 %182 }
 0x265   :  { %238 = vrcp.f32 %v183_v3  ;;  %v196_v7 = vand.u32 2147483648, %v183_v3  ;;  %v194_v9 = vand.u32 2147483647, %v183_v3  ;;  %vm190_vm7 = vweird.f32 %v183_v3 }
 0x267   :  { %v197_v11 = vor.u32 1.1754944e-38, %v196_v7  ;;  %vm195_vm9 = vcmp.eq.f32.partialorder %v194_v9, 8.507059e+37 }
 0x26b   :  { %v239_v4 = vpop.eup %238 }
 0x26c   :  { %v186_v5 = vmul.f32 %v239_v4, %v183_v3  ;;  %vm191_vm6 = vweird.f32 %v239_v4 }
 0x26d   :  { %vm192_vm8 = vmor %vm190_vm7, %vm191_vm6 }
 0x26e   :  { %v187_v6 = vsub.f32 1.0, %v186_v5 }
 0x270   :  { %v188_v8 = vmul.f32 %v239_v4, %v187_v6 }
 0x272   :  { %v189_v10 = vadd.f32 %v239_v4, %v188_v8 }
 0x274   :  { %v193_v12 = vsel %vm192_vm8, %v239_v4, %v189_v10 }
 0x275   :  { %v198_v13 = vsel %vm195_vm9, %v197_v11, %v193_v12 }
 0x276   :  { %v199_v15 = vmul.f32 %v198_v13, %v178_v14 }
 0x278   :  { %200 = vst.msk [vmem:[#allocation11] sm:$0x3] %vm68_vm5, %v199_v15 }
 0x279   :  { %211 = dma.vmem_to_hbm [thread:$0]  %s207_s3, 32, %s209_s8, [#allocation7]  }
 0x27a   :  { %340 = dma.done.wait [#allocation7], 32  }
 0x27b   :  { %341 = vsyncadd [#allocation7], 4294967264 }
 0x27c   :  { %216 = vsyncpa [#allocation6], 1 }
 0x27d   :  { %217 = vsyncpa [#allocation9], 1 }
 0x27e   :  { %218 = vsyncpa [#allocation7], 1 }

</bundles_post_ra>
